<compile_context>
chip_gen: v7x
topology: tpu7x:2x2x1
jax: 0.10.0
libtpu: 0.0.40
codegen_flags: <defaults>
</compile_context>

<pallas_src>
import jax
import jax.numpy as jnp
from jax import lax
from jax.experimental import pallas as pl
from jax.experimental.pallas import tpu as pltpu


def _make_kernel(Cg2, HW, nb, eps, inv_n):
    def kernel(xcol_ref, res_ref, wg_ref, w1_ref, b1_ref, o_ref):
        # xcol_ref: (1, K+1, nb*HW) bf16  im2col'd samples + ones row (bias)
        # res_ref : (1, Cres, nb*HW) f32  residual (NCHW samples, lane-packed)
        # wg_ref  : (Cgate, K+1)    bf16  conv weight with bias column folded in
        # w1_ref  : (Cres, Cg2)     f32   1x1 conv weight
        # b1_ref  : (Cres, 1)       f32   1x1 conv bias
        # o_ref   : (1, Cres, nb*HW) f32
        #
        # Whole causal conv (+bias) for nb samples: one bf16 MXU matmul,
        # f32 accumulation.
        y = jnp.dot(wg_ref[...], xcol_ref[0],
                    preferred_element_type=jnp.float32)

        # Gated activation (channels live on the sublane axis).
        a = y[:Cg2, :]
        b = y[Cg2:, :]
        # sigmoid(b) = 0.5*tanh(0.5*b)+0.5 : keeps the work on the EUP,
        # removes the per-element VPU divide.
        gate = jnp.tanh(a) * (0.5 * jnp.tanh(0.5 * b) + 0.5)

        # 1x1 conv (tiny matmul, f32), bias, residual add - all f32.
        out = jnp.dot(w1_ref[...], gate, preferred_element_type=jnp.float32)
        out = out + b1_ref[...] + res_ref[0]

        # Per-sample LayerNorm over (Cres, H, W), elementwise_affine=False.
        # HW is a multiple of 128, so the per-sample lane slices are
        # tile-aligned and cheap.  One-pass stats: s1 and s2 are issued
        # back-to-back so the two cross-lane reductions overlap on the XLU.
        for i in range(nb):
            sl = out[:, i * HW:(i + 1) * HW]
            s1 = jnp.sum(sl)
            s2 = jnp.sum(sl * sl)
            mean = s1 * inv_n
            var = jnp.maximum(s2 * inv_n - mean * mean, 0.0)
            o_ref[0, :, pl.ds(i * HW, HW)] = (
                (sl - mean) * lax.rsqrt(var + eps)).astype(o_ref.dtype)

    return kernel


def resblock2d(x, conv_w, conv_b, w1, b1, *, kernel_size, stride, dilation,
               eps=1e-5, nb_max=8):
    """x: (N, Cres, H, W) NCHW. conv_w: (Cgate, Cres, kH, kW). conv_b: (Cgate,).
    w1: (Cres, Cgate//2) 1x1-conv weight. b1: (Cres,)."""
    N, Cres, H, W = x.shape
    Cgate = conv_w.shape[0]
    kH, kW = kernel_size
    dil = dilation
    assert stride == 1, "Resblock2d residual add requires stride == 1"
    pW = (kW - 1) // 2
    assert 2 * pW == dil * (kW - 1), \
        "width padding must be 'same' for the residual add to be valid"
    pH_top = (kH - 1) * dil          # causal pad: top only (output trim folded in)
    Cg2 = Cgate // 2
    HW = H * W
    K = Cres * kH * kW
    K1 = K + 1                       # +1 ones-row to fold the conv bias in

    # Samples per grid step: largest divisor of N that still leaves >= 2 grid
    # steps (so v7x's two TensorCores both get work), capped by nb_max.
    nb = 1
    for cand in range(min(nb_max, max(N // 2, 1)), 0, -1):
        if N % cand == 0:
            nb = cand
            break
    G = N // nb
    L = nb * HW

    xf = x.astype(jnp.float32)
    x_pad = jnp.pad(xf, ((0, 0), (0, 0), (pH_top, 0), (pW, pW)))

    # im2col (transposed): (N, K, HW); K ordered (ci, kh, kw) to match
    # conv_w.reshape(Cgate, K); spatial flattened h*W + w (NCHW order).
    pats = [x_pad[:, :, kh * dil:kh * dil + H, kw * dil:kw * dil + W]
            for kh in range(kH) for kw in range(kW)]
    xcol = jnp.stack(pats, axis=2).reshape(N, K, HW)
    # Ones row -> conv bias is absorbed by the matmul (one fewer VPU pass).
    xcol = jnp.concatenate([xcol, jnp.ones((N, 1, HW), xcol.dtype)], axis=1)
    # Fold nb samples into the lane axis: (G, K+1, nb*HW), bf16 for the MXU.
    xcolT = (xcol.reshape(G, nb, K1, HW).transpose(0, 2, 1, 3)
             .reshape(G, K1, L).astype(jnp.bfloat16))
    resT = (xf.reshape(G, nb, Cres, HW).transpose(0, 2, 1, 3)
            .reshape(G, Cres, L))

    wg = jnp.concatenate(
        [conv_w.reshape(Cgate, K), conv_b.reshape(Cgate, 1)],
        axis=1).astype(jnp.bfloat16)
    w1m = w1.reshape(Cres, Cg2).astype(jnp.float32)
    b1m = b1.reshape(Cres, 1).astype(jnp.float32)

    kernel = _make_kernel(Cg2, HW, nb, eps, 1.0 / float(Cres * HW))

    # Explicit VMEM budget (double-buffered blocks + resident weights), with
    # headroom; capped for v7x's 64 MiB physical VMEM.
    block_bytes = (K1 * L * 2) + 2 * (Cres * L * 4) \
        + Cgate * K1 * 2 + Cres * Cg2 * 4 + Cres * 4
    vmem_limit = int(min(64 * 1024 * 1024,
                         max(32 * 1024 * 1024, 4 * block_bytes)))

    out = pl.pallas_call(
        kernel,
        out_shape=jax.ShapeDtypeStruct((G, Cres, L), jnp.float32),
        grid_spec=pltpu.PrefetchScalarGridSpec(
            num_scalar_prefetch=0,
            grid=(G,),
            in_specs=[
                pl.BlockSpec((1, K1, L), lambda g: (g, 0, 0)),
                pl.BlockSpec((1, Cres, L), lambda g: (g, 0, 0)),
                pl.BlockSpec((Cgate, K1), lambda g: (0, 0)),
                pl.BlockSpec((Cres, Cg2), lambda g: (0, 0)),
                pl.BlockSpec((Cres, 1), lambda g: (0, 0)),
            ],
            out_specs=pl.BlockSpec((1, Cres, L), lambda g: (g, 0, 0)),
        ),
        compiler_params=pltpu.CompilerParams(
            dimension_semantics=("parallel",),
            vmem_limit_bytes=vmem_limit,
            # Let XLA fuse the im2col / regrouping producers into the pallas
            # input DMAs so the K-times-inflated xcol is not materialized in
            # HBM (weights stay as-is).
            allow_input_fusion=[True, True, False, False, False],
        ),
    )(xcolT, resT, wg, w1m, b1m)

    return (out.reshape(G, Cres, nb, HW).transpose(0, 2, 1, 3)
            .reshape(N, Cres, H, W))


def resblock2d_reference(x, conv_w, conv_b, w1, b1, *, kernel_size, stride,
                         dilation, eps=1e-5, x_conv=None):
    """Pure-JAX reference matching the PyTorch module (NCHW).
    `x_conv` optionally substitutes the conv input (used to emulate the
    kernel's bf16 matmul operands); the residual always uses `x`."""
    kH, kW = kernel_size
    dil = dilation
    pH = (kH - 1) * dil
    pW = (kW - 1) // 2
    x_in = x if x_conv is None else x_conv
    y = lax.conv_general_dilated(
        x_in, conv_w, window_strides=(stride, stride),
        padding=[(pH, pH), (pW, pW)], rhs_dilation=(dil, dil),
        dimension_numbers=("NCHW", "OIHW", "NCHW"),
        precision=lax.Precision.HIGHEST)
    y = y + conv_b[None, :, None, None]
    y = y[:, :, :-pH, :]                                   # causal trim on H
    Cg2 = y.shape[1] // 2
    a, b = y[:, :Cg2], y[:, Cg2:]
    gate = jnp.tanh(a) * jax.nn.sigmoid(b)
    out = jnp.einsum("nchw,oc->nohw", gate, w1,
                     precision=lax.Precision.HIGHEST) + b1[None, :, None, None]
    out = out + x
    mean = jnp.mean(out, axis=(1, 2, 3), keepdims=True)
    var = jnp.mean((out - mean) ** 2, axis=(1, 2, 3), keepdims=True)
    return (out - mean) / jnp.sqrt(var + eps)


if __name__ == "__main__":
    key = jax.random.PRNGKey(0)
    # N=4 keeps shapes small but exercises the nb=2 samples-per-step path
    # over a 2-step (megacore-parallel) grid.
    N, Cres, H, W = 4, 4, 16, 16
    Cgate = 8
    kH, kW = 3, 3
    stride, dilation = 1, 1

    kx, kw_conv, kw_1x1 = jax.random.split(key, 3)
    x = jax.random.normal(kx, (N, Cres, H, W), jnp.float32)

    # Deterministic init matching the module's __init__:
    # xavier_normal_(conv.weight), zeros bias; same for the 1x1 conv.
    fan_in = Cres * kH * kW
    fan_out = Cgate * kH * kW
    std = (2.0 / (fan_in + fan_out)) ** 0.5
    conv_w = std * jax.random.normal(kw_conv, (Cgate, Cres, kH, kW), jnp.float32)
    conv_b = jnp.zeros((Cgate,), jnp.float32)

    Cg2 = Cgate // 2
    std1 = (2.0 / (Cg2 + Cres)) ** 0.5
    w1 = std1 * jax.random.normal(kw_1x1, (Cres, Cg2), jnp.float32)
    b1 = jnp.zeros((Cres,), jnp.float32)

    out = resblock2d(x, conv_w, conv_b, w1, b1,
                     kernel_size=(kH, kW), stride=stride, dilation=dilation)
    out = jax.block_until_ready(out)
    assert out.shape == (N, Cres, H, W), out.shape

    # Tight check: feed the reference the same bf16-rounded conv operands the
    # kernel's MXU matmul sees (residual + epilogue stay f32 in both paths).
    to_bf16 = lambda a: a.astype(jnp.bfloat16).astype(jnp.float32)
    ref_tight = resblock2d_reference(
        x, to_bf16(conv_w), to_bf16(conv_b), w1, b1,
        kernel_size=(kH, kW), stride=stride, dilation=dilation,
        x_conv=to_bf16(x))
    # Loose sanity check vs the pure-f32 reference (bf16 matmul rounding only).
    ref_f32 = resblock2d_reference(
        x, conv_w, conv_b, w1, b1,
        kernel_size=(kH, kW), stride=stride, dilation=dilation)

    err_tight = float(jnp.max(jnp.abs(out - ref_tight)))
    err_f32 = float(jnp.max(jnp.abs(out - ref_f32)))
    assert jnp.allclose(out, ref_tight, rtol=2e-3, atol=2e-3), err_tight
    assert jnp.allclose(out, ref_f32, rtol=1e-1, atol=1e-1), err_f32
    print("KERNEL_OK")
</pallas_src>

<mosaic_0001>
module attributes {stable_mosaic.version = 11 : i64} {
  func.func @kernel(%arg0: i32, %arg1: memref<1x37x512xbf16, #tpu.memory_space<vmem>>, %arg2: memref<1x4x512xf32, #tpu.memory_space<vmem>>, %arg3: memref<8x37xbf16, #tpu.memory_space<vmem>>, %arg4: memref<4x4xf32, #tpu.memory_space<vmem>>, %arg5: memref<4x1xf32, #tpu.memory_space<vmem>>, %arg6: memref<1x4x512xf32, #tpu.memory_space<vmem>>) attributes {dimension_semantics = [#tpu.dimension_semantics<parallel>], iteration_bounds = array<i64: 2>, scalar_prefetch = 0 : i64, scratch_operands = 0 : i64, tpu.core_type = #tpu.core_type<tc>, window_params = [{transform_indices = @transform_0, window_bounds = array<i64: 1, 37, 512>}, {transform_indices = @transform_1, window_bounds = array<i64: 1, 4, 512>}, {pipeline_mode = #tpu.pipeline_mode<synchronous>, transform_indices = @transform_2, window_bounds = array<i64: 8, 37>}, {pipeline_mode = #tpu.pipeline_mode<synchronous>, transform_indices = @transform_3, window_bounds = array<i64: 4, 4>}, {pipeline_mode = #tpu.pipeline_mode<synchronous>, transform_indices = @transform_4, window_bounds = array<i64: 4, 1>}, {transform_indices = @transform_5, window_bounds = array<i64: 1, 4, 512>}]} {
    %c0 = arith.constant 0 : index
    %c0_0 = arith.constant 0 : index
    %0 = vector.load %arg3[%c0, %c0_0] : memref<8x37xbf16, #tpu.memory_space<vmem>>, vector<8x37xbf16>
    %c0_1 = arith.constant 0 : index
    %c0_2 = arith.constant 0 : index
    %c0_3 = arith.constant 0 : index
    %1 = vector.load %arg1[%c0_1, %c0_2, %c0_3] : memref<1x37x512xbf16, #tpu.memory_space<vmem>>, vector<1x37x512xbf16>
    %2 = vector.shape_cast %1 : vector<1x37x512xbf16> to vector<37x512xbf16>
    %cst = arith.constant dense<0.000000e+00> : vector<8x512xf32>
    %3 = tpu.matmul %0, %2, %cst {dimension_numbers = #tpu.dot_dimension_numbers<[1], [0], [0], [1], [0, 0, 1, 1], [], []>} : vector<8x37xbf16>, vector<37x512xbf16>, vector<8x512xf32> -> vector<8x512xf32>
    %4 = vector.extract_strided_slice %3 {offsets = [0, 0], sizes = [4, 512], strides = [1, 1]} : vector<8x512xf32> to vector<4x512xf32>
    %5 = vector.extract_strided_slice %3 {offsets = [4, 0], sizes = [4, 512], strides = [1, 1]} : vector<8x512xf32> to vector<4x512xf32>
    %6 = math.tanh %4 : vector<4x512xf32>
    %cst_4 = arith.constant 5.000000e-01 : f32
    %7 = vector.broadcast %cst_4 : f32 to vector<4x512xf32>
    %8 = arith.mulf %7, %5 : vector<4x512xf32>
    %9 = math.tanh %8 : vector<4x512xf32>
    %cst_5 = arith.constant 5.000000e-01 : f32
    %10 = vector.broadcast %cst_5 : f32 to vector<4x512xf32>
    %11 = arith.mulf %10, %9 : vector<4x512xf32>
    %cst_6 = arith.constant 5.000000e-01 : f32
    %12 = vector.broadcast %cst_6 : f32 to vector<4x512xf32>
    %13 = arith.addf %11, %12 : vector<4x512xf32>
    %14 = arith.mulf %6, %13 : vector<4x512xf32>
    %c0_7 = arith.constant 0 : index
    %c0_8 = arith.constant 0 : index
    %15 = vector.load %arg4[%c0_7, %c0_8] : memref<4x4xf32, #tpu.memory_space<vmem>>, vector<4x4xf32>
    %cst_9 = arith.constant dense<0.000000e+00> : vector<4x512xf32>
    %16 = tpu.matmul %15, %14, %cst_9 {dimension_numbers = #tpu.dot_dimension_numbers<[1], [0], [0], [1], [0, 0, 1, 1], [], []>} : vector<4x4xf32>, vector<4x512xf32>, vector<4x512xf32> -> vector<4x512xf32>
    %c0_10 = arith.constant 0 : index
    %c0_11 = arith.constant 0 : index
    %17 = vector.load %arg5[%c0_10, %c0_11] : memref<4x1xf32, #tpu.memory_space<vmem>>, vector<4x1xf32>
    %18 = vector.broadcast %17 : vector<4x1xf32> to vector<4x512xf32>
    %19 = arith.addf %16, %18 : vector<4x512xf32>
    %c0_12 = arith.constant 0 : index
    %c0_13 = arith.constant 0 : index
    %c0_14 = arith.constant 0 : index
    %20 = vector.load %arg2[%c0_12, %c0_13, %c0_14] : memref<1x4x512xf32, #tpu.memory_space<vmem>>, vector<1x4x512xf32>
    %21 = vector.shape_cast %20 : vector<1x4x512xf32> to vector<4x512xf32>
    %22 = arith.addf %19, %21 : vector<4x512xf32>
    %23 = vector.extract_strided_slice %22 {offsets = [0, 0], sizes = [4, 256], strides = [1, 1]} : vector<4x512xf32> to vector<4x256xf32>
    %24 = vector.shape_cast %23 : vector<4x256xf32> to vector<1x4x256xf32>
    %cst_15 = arith.constant dense<0.000000e+00> : vector<1xf32>
    %25 = vector.multi_reduction <add>, %24, %cst_15 [1, 2] : vector<1x4x256xf32> to vector<1xf32>
    %26 = vector.shape_cast %25 : vector<1xf32> to vector<1x1x1xf32>
    %27 = vector.extract %26[0, 0, 0] : f32 from vector<1x1x1xf32>
    %28 = arith.mulf %23, %23 : vector<4x256xf32>
    %29 = vector.shape_cast %28 : vector<4x256xf32> to vector<1x4x256xf32>
    %cst_16 = arith.constant dense<0.000000e+00> : vector<1xf32>
    %30 = vector.multi_reduction <add>, %29, %cst_16 [1, 2] : vector<1x4x256xf32> to vector<1xf32>
    %31 = vector.shape_cast %30 : vector<1xf32> to vector<1x1x1xf32>
    %32 = vector.extract %31[0, 0, 0] : f32 from vector<1x1x1xf32>
    %cst_17 = arith.constant 9.765625E-4 : f32
    %33 = arith.mulf %27, %cst_17 : f32
    %cst_18 = arith.constant 9.765625E-4 : f32
    %34 = arith.mulf %32, %cst_18 : f32
    %35 = arith.mulf %33, %33 : f32
    %36 = arith.subf %34, %35 : f32
    %cst_19 = arith.constant 0.000000e+00 : f32
    %37 = arith.maximumf %36, %cst_19 : f32
    %38 = vector.broadcast %33 : f32 to vector<4x256xf32>
    %39 = arith.subf %23, %38 : vector<4x256xf32>
    %cst_20 = arith.constant 9.99999974E-6 : f32
    %40 = arith.addf %37, %cst_20 : f32
    %41 = math.rsqrt %40 : f32
    %42 = vector.broadcast %41 : f32 to vector<4x256xf32>
    %43 = arith.mulf %39, %42 : vector<4x256xf32>
    %c0_21 = arith.constant 0 : index
    %c0_22 = arith.constant 0 : index
    %c0_23 = arith.constant 0 : index
    %44 = vector.load %arg6[%c0_21, %c0_22, %c0_23] : memref<1x4x512xf32, #tpu.memory_space<vmem>>, vector<1x4x256xf32>
    %45 = vector.shape_cast %44 : vector<1x4x256xf32> to vector<4x256xf32>
    %46 = vector.shape_cast %43 : vector<4x256xf32> to vector<1x4x256xf32>
    tpu.vector_store %arg6[%c0_21, %c0_22, %c0_23], %46 {strides = array<i32>} : memref<1x4x512xf32, #tpu.memory_space<vmem>>, vector<1x4x256xf32>,
    %47 = vector.extract_strided_slice %22 {offsets = [0, 256], sizes = [4, 256], strides = [1, 1]} : vector<4x512xf32> to vector<4x256xf32>
    %48 = vector.shape_cast %47 : vector<4x256xf32> to vector<1x4x256xf32>
    %cst_24 = arith.constant dense<0.000000e+00> : vector<1xf32>
    %49 = vector.multi_reduction <add>, %48, %cst_24 [1, 2] : vector<1x4x256xf32> to vector<1xf32>
    %50 = vector.shape_cast %49 : vector<1xf32> to vector<1x1x1xf32>
    %51 = vector.extract %50[0, 0, 0] : f32 from vector<1x1x1xf32>
    %52 = arith.mulf %47, %47 : vector<4x256xf32>
    %53 = vector.shape_cast %52 : vector<4x256xf32> to vector<1x4x256xf32>
    %cst_25 = arith.constant dense<0.000000e+00> : vector<1xf32>
    %54 = vector.multi_reduction <add>, %53, %cst_25 [1, 2] : vector<1x4x256xf32> to vector<1xf32>
    %55 = vector.shape_cast %54 : vector<1xf32> to vector<1x1x1xf32>
    %56 = vector.extract %55[0, 0, 0] : f32 from vector<1x1x1xf32>
    %cst_26 = arith.constant 9.765625E-4 : f32
    %57 = arith.mulf %51, %cst_26 : f32
    %cst_27 = arith.constant 9.765625E-4 : f32
    %58 = arith.mulf %56, %cst_27 : f32
    %59 = arith.mulf %57, %57 : f32
    %60 = arith.subf %58, %59 : f32
    %cst_28 = arith.constant 0.000000e+00 : f32
    %61 = arith.maximumf %60, %cst_28 : f32
    %62 = vector.broadcast %57 : f32 to vector<4x256xf32>
    %63 = arith.subf %47, %62 : vector<4x256xf32>
    %cst_29 = arith.constant 9.99999974E-6 : f32
    %64 = arith.addf %61, %cst_29 : f32
    %65 = math.rsqrt %64 : f32
    %66 = vector.broadcast %65 : f32 to vector<4x256xf32>
    %67 = arith.mulf %63, %66 : vector<4x256xf32>
    %c0_30 = arith.constant 0 : index
    %c0_31 = arith.constant 0 : index
    %c256 = arith.constant 256 : index
    %68 = vector.load %arg6[%c0_30, %c0_31, %c256] : memref<1x4x512xf32, #tpu.memory_space<vmem>>, vector<1x4x256xf32>
    %69 = vector.shape_cast %68 : vector<1x4x256xf32> to vector<4x256xf32>
    %70 = vector.shape_cast %67 : vector<4x256xf32> to vector<1x4x256xf32>
    tpu.vector_store %arg6[%c0_30, %c0_31, %c256], %70 {strides = array<i32>} : memref<1x4x512xf32, #tpu.memory_space<vmem>>, vector<1x4x256xf32>,
    return
  }
  func.func @transform_0(%arg0: i32) -> (i32, i32, i32) {
    %c0_i32 = arith.constant 0 : i32
    %c0_i32_0 = arith.constant 0 : i32
    %c0_i32_1 = arith.constant 0 : i32
    return %arg0, %c0_i32, %c0_i32_0 : i32, i32, i32
  }
  func.func @transform_1(%arg0: i32) -> (i32, i32, i32) {
    %c0_i32 = arith.constant 0 : i32
    %c0_i32_0 = arith.constant 0 : i32
    %c0_i32_1 = arith.constant 0 : i32
    return %arg0, %c0_i32, %c0_i32_0 : i32, i32, i32
  }
  func.func @transform_2(%arg0: i32) -> (i32, i32) {
    %c0_i32 = arith.constant 0 : i32
    %c0_i32_0 = arith.constant 0 : i32
    %c0_i32_1 = arith.constant 0 : i32
    return %c0_i32, %c0_i32_0 : i32, i32
  }
  func.func @transform_3(%arg0: i32) -> (i32, i32) {
    %c0_i32 = arith.constant 0 : i32
    %c0_i32_0 = arith.constant 0 : i32
    %c0_i32_1 = arith.constant 0 : i32
    return %c0_i32, %c0_i32_0 : i32, i32
  }
  func.func @transform_4(%arg0: i32) -> (i32, i32) {
    %c0_i32 = arith.constant 0 : i32
    %c0_i32_0 = arith.constant 0 : i32
    %c0_i32_1 = arith.constant 0 : i32
    return %c0_i32, %c0_i32_0 : i32, i32
  }
  func.func @transform_5(%arg0: i32) -> (i32, i32, i32) {
    %c0_i32 = arith.constant 0 : i32
    %c0_i32_0 = arith.constant 0 : i32
    %c0_i32_1 = arith.constant 0 : i32
    return %arg0, %c0_i32, %c0_i32_0 : i32, i32, i32
  }
}

</mosaic_0001>

<bundles_post_ra>
// kernel: tpu_custom_call.1
= control target key start
LH: loop header
LB: loop body
LE: loop exit
PB: predicated region body
PF: predicated region fallthrough
CT: control target
= control target key end

     0   :  { %10 = vsyncpa [#allocation3], 0  ;;  %s1186_s0 = inlined_call_operand.vmem [shape: bf16[2,37,512], index: 0, kind: input, shape index: {}]   ;;  %s1187_s1 = inlined_call_operand.vmem [shape: f32[2,4,512], index: 1, kind: input, shape index: {}]   ;;  %s1188_s2 = inlined_call_operand.vmem [shape: bf16[8,37], index: 2, kind: input, shape index: {}]   ;;  %s1189_s3 = inlined_call_operand.vmem [shape: f32[4,4], index: 3, kind: input, shape index: {}]   ;;  %s1190_s4 = inlined_call_operand.vmem [shape: f32[4,1], index: 4, kind: input, shape index: {}]   ;;  %s1191_s5 = inlined_call_operand.hbm [shape: f32[2,4,512], index: 5, kind: output, shape index: {}]  }
   0x1   :  { %12 = vsyncpa [#allocation3 + $0x1], 0  ;;  %s1028_s18 = smov 0   ;;  %s1030_s19 = smov 0  }
   0x2   :  { %s1032_s20 = smov 0   ;;  %s1034_s21 = smov 0  }
   0x3 LB: > { %s1049_s22 = sadd.s32 4294967295, %s991_s21   ;;  %s799_s23 = sadd.s32 4294967294, %s991_s21   ;;  %s991_s21 = sphi %s1034_s21, %s1197_s21   ;;  %s987_s20 = sphi %s1032_s20, %s1196_s20   ;;  %s983_s19 = sphi %s1030_s19, %s1195_s19   ;;  %s979_s18 = sphi %s1028_s18, %s1194_s18  }
   0x4   : > { %s1053_s24 = sadd.s32 1, %s991_s21   ;;  %s140_s25 = sadd.s32 1, %s987_s20 }
   0x5   : > { %s137_s26 = ssub.s32 %s991_s21, %s1053_s24  ;;  %p150_p0 = scmp.ne.s32.totalorder %s987_s20, %s983_s19 }
   0x6   : > { %p138_p1 = scmp.eq.s32.totalorder %s137_s26, 0  ;;  %p151_p2 = scmp.eq.s32.totalorder %s1049_s22, 1 }
   0x7   : > { %p156_p3 = scmp.ne.s32.totalorder %s983_s19, %s979_s18  ;;  %p157_p4 = scmp.eq.s32.totalorder %s799_s23, 1 }
   0x8   : > { %s1064_s27 = scalar_select %p138_p1, %s987_s20, %s140_s25  }
   0x9   : > { %p1066_p5 = por %p151_p2, %p150_p0  ;;  %p1070_p6 = por %p157_p4, %p156_p3 }
   0xa   : > { %p802_p7 = scmp.ge.s32.totalorder %s991_s21, 1  ;;  %p200_p8 = scmp.lt.s32.totalorder %s991_s21, 3 }
   0xc   : > { %p201_p9 = pnand %p802_p7, %p200_p8 }
   0xd   : > { %p233_p10 = scmp.lt.s32.totalorder (!%p201_p9), %s1049_s22, 1  ;;  %v993_v0 = vmov (!%p201_p9), 0   ;;  %vm309_vm0 = vcmask (!%p201_p9), 1041408   ;;  %vm310_vm1 = vcmask (!%p201_p9), 1042432   ;;  %v994_v3 = vmov (!%p201_p9), 65535   ;;  %s996_s10 = smov (!%p201_p9), 0.0  }
   0xe   : > { %204 = sbr.rel (%p201_p9) target bundleno = 862 (0x35e), region = 40  ;;  %357 = vmatprep.mubr.bf16.mxu0 (!%p201_p9), %v993_v0  ;;  %398 = vmatprep.mubr.bf16.mxu1 (!%p201_p9), %v993_v0  ;;  %v311_v4 = vsel (!%p201_p9), %vm309_vm0, 4294967295, %v994_v3  ;;  %v244_v22 = vld [vmem:[%s1188_s2] sm:$0xf] (!%p201_p9)  ;;  %vm305_vm2 = vcmask (!%p201_p9), 302080   ;;  %v995_v23 = vmov (!%p201_p9), 0.0  }
   0xf   : > { %890 = vset.pattern.permute.xlu0 (!%p201_p9), %v993_v0  ;;  %v312_v10 = vsel (!%p201_p9), %vm310_vm1, %v311_v4, 0  ;;  %v444_v24 = vld [vmem:[%s1190_s4] sm:$0xf] (!%p201_p9)  ;;  %vm454_vm3 = vcmask (!%p201_p9), 1043456   ;;  %vm450_vm4 = vcmask (!%p201_p9), 31744   ;;  %s230_s13 = sand.u32 (!%p201_p9), 1, %s983_s19  }
  0x10   : > { %447 = vperm.xlu0 (!%p201_p9), %890, %v444_v24   ;;  %v443_v58 = vld [vmem:[%s1189_s3] sm:$0xf] (!%p201_p9)  ;;  %s803_s14 = sshll.u32 (!%p201_p9), %s230_s13, 4 }
  0x15   : > { %s1078_s30 = scalar_select %p233_p10, %s1049_s22, 1 }
  0x17   : > { %s834_s6 = smul.u32 80, %s1078_s30  ;;  %s832_s16 = sshll.u32 %s1078_s30, 4 }
  0x18   : > { %s242_s25 = scalar_lea.vmem %s1187_s1, %s832_s16 }
  0x19   : > { %s237_s9 = scalar_lea.vmem %s1186_s0, %s834_s6  ;;  %v609_v62 = vld [vmem:[%s242_s25] sm:$0xff]  ;;  %v610_v4 = vld [vmem:[%s242_s25 + $0x8] sm:$0xff] }
  0x1a   : > { %v891_v1 = vld [vmem:[%s237_s9 + $0x4] ss:$16 sps:$4 sm:$0xff]   ;;  %v893_v2 = vld [vmem:[%s237_s9] ss:$16 sps:$4 sm:$0xff]   ;;  %v897_v7 = vld [vmem:[%s237_s9 + $0xc] ss:$16 sps:$4 sm:$0xff]  }
  0x1b   : > { %325 = vmatprep.subr.bf16.mxu0 %v891_v1  ;;  %v894_v5 = vld [vmem:[%s237_s9 + $0x24] ss:$16 sps:$4 sm:$0xff]   ;;  %v896_v6 = vld [vmem:[%s237_s9 + $0x20] ss:$16 sps:$4 sm:$0xff]   ;;  %v899_v8 = vld [vmem:[%s237_s9 + $0x8] ss:$16 sps:$4 sm:$0xff]   ;;  %366 = vmatprep.subr.bf16.mxu1 %v897_v7  ;;  %v613_v1 = vcombine.high %v609_v62, %v609_v62 }
  0x1c   : > { %326 = vmatpush1.bf16.msra.mxu0 %v893_v2  ;;  %v253_v9 = vld [vmem:[%s237_s9 + $0x40] sm:$0x77]  ;;  %v902_v13 = vld [vmem:[%s237_s9 + $0x2c] ss:$16 sps:$4 sm:$0xff]   ;;  %367 = vmatpush1.bf16.msra.mxu1 %v899_v8  ;;  %v904_v15 = vld [vmem:[%s237_s9 + $0x28] ss:$16 sps:$4 sm:$0xff]  }
  0x1d   : > { %327 = vmatprep.subr.bf16.mxu0 %v894_v5  ;;  %v816_v11 = vcombine.high %v253_v9, %v253_v9  ;;  %v815_v12 = vcombine.low %v253_v9, %v253_v9  ;;  %v254_v14 = vld [vmem:[%s237_s9 + $0x48] sm:$0x77]  ;;  %368 = vmatprep.subr.bf16.mxu1 %v902_v13  ;;  %v614_v9 = vcombine.high %v610_v4, %v610_v4 }
  0x1e   : > { %v818_v16 = vcombine.high %v254_v14, %v254_v14  ;;  %v817_v17 = vcombine.low %v254_v14, %v254_v14 }
  0x1f   : > { %v317_v18 = vand.u32 %v816_v11, %v312_v10  ;;  %v314_v19 = vand.u32 %v815_v12, %v312_v10 }
  0x20   : > { %328 = vmatpush1.bf16.msra.mxu0 %v896_v6  ;;  %v323_v20 = vand.u32 %v818_v16, %v312_v10  ;;  %369 = vmatpush1.bf16.msra.mxu1 %v904_v15  ;;  %v320_v21 = vand.u32 %v817_v17, %v312_v10 }
  0x21   : > { %329 = vmatprep.subr.bf16.mxu0 %v317_v18 }
  0x22   : > { %370 = vmatprep.subr.bf16.mxu1 %v323_v20 }
  0x24   : > { %330 = vmatpush1.bf16.msra.mxu0 %v314_v19  ;;  %371 = vmatpush1.bf16.msra.mxu1 %v320_v21 }
  0x27   : > { %819 = vmatmul.mubr.msk.bf16.vlgmr.msra.gmra.mrb[0].mxu0 %vm305_vm2, %v244_v22  ;;  %820 = vmatmul.mubr.msk.bf16.vlgmr.msra.gmra.mrb[0].mxu1 %vm305_vm2, %v244_v22 }
  0x28   : > { %531 = vmatprep.mubr.f32.mxu0 %v995_v23  ;;  %602 = vmatprep.mubr.f32.mxu1 %v995_v23 }
  0x8f   : > { %v448_v63 = vpop.permute.xlu0 %447 }
  0xfa   : > { %v359_v25 = vpop.f32.mrb[0].mxu0  ;;  %v400_v31 = vpop.f32.mrb[0].mxu1 }
  0xfb   : > { %v411_v26 = vmul.f32 0.5, %v359_v25  ;;  %v361_v27 = vpop.f32.mrb[1].mxu0  ;;  %v413_v32 = vmul.f32 0.5, %v400_v31  ;;  %v402_v33 = vpop.f32.mrb[1].mxu1 }
  0xfc   : > { %v412_v28 = vmul.f32 0.5, %v361_v27  ;;  %v363_v29 = vpop.f32.mrb[2].mxu0  ;;  %v414_v34 = vmul.f32 0.5, %v402_v33  ;;  %v404_v35 = vpop.f32.mrb[2].mxu1 }
  0xfd   : > { %909 = vtanh.f32 %v411_v26  ;;  %v364_v30 = vpop.f32.mrb[3].mxu0  ;;  %v405_v36 = vpop.f32.mrb[3].mxu1 }
  0xfe   : > { %911 = vtanh.f32 %v412_v28 }
  0xff   : > { %913 = vtanh.f32 %v413_v32 }
 0x100   : > { %915 = vtanh.f32 %v414_v34 }
 0x101   : > { %917 = vtanh.f32 %v359_v25 }
 0x102   : > { %919 = vtanh.f32 %v361_v27 }
 0x103   : > { %921 = vtanh.f32 %v400_v31 }
 0x104   : > { %923 = vtanh.f32 %v402_v33 }
 0x107   : > { %v910_v37 = vpop.eup %909 }
 0x108   : > { %v912_v38 = vpop.eup %911  ;;  %v419_v39 = vmul.f32 0.5, %v910_v37 }
 0x109   : > { %v420_v40 = vmul.f32 0.5, %v912_v38  ;;  %v914_v41 = vpop.eup %913 }
 0x10a   : > { %v423_v42 = vadd.f32 0.5, %v419_v39  ;;  %v421_v44 = vmul.f32 0.5, %v914_v41  ;;  %v916_v45 = vpop.eup %915 }
 0x10b   : > { %v424_v43 = vadd.f32 0.5, %v420_v40  ;;  %v918_v47 = vpop.eup %917  ;;  %v422_v50 = vmul.f32 0.5, %v916_v45 }
 0x10c   : > { %v431_v46 = vrot.slane %v423_v42, 4  ;;  %v425_v49 = vadd.f32 0.5, %v421_v44  ;;  %v920_v51 = vpop.eup %919 }
 0x10d   : > { %v432_v48 = vrot.slane %v424_v43, 4  ;;  %v922_v52 = vpop.eup %921  ;;  %v426_v54 = vadd.f32 0.5, %v422_v50 }
 0x10e   : > { %v433_v53 = vrot.slane %v425_v49, 4  ;;  %v924_v56 = vpop.eup %923  ;;  %v439_v57 = vmul.f32 %v918_v47, %v431_v46 }
 0x10f   : > { %v440_v55 = vmul.f32 %v920_v51, %v432_v48  ;;  %v434_v59 = vrot.slane %v426_v54, 4 }
 0x110   : > { %v441_v60 = vmul.f32 %v922_v52, %v433_v53 }
 0x111   : > { %821 = vmatprep.subr.msk.mxu0 %vm454_vm3, %v440_v55  ;;  %v442_v61 = vmul.f32 %v924_v56, %v434_v59 }
 0x112   : > { %822 = vmatpush1.msk.msra.mxu0 %vm454_vm3, %v439_v57 }
 0x113   : > { %823 = vmatmul.mubr.msk.f32.vlgmr.msra.gmra.mrb[4].mxu0 %vm450_vm4, %v443_v58  ;;  %824 = vmatprep.subr.msk.mxu1 %vm454_vm3, %v442_v61 }
 0x114   : > { %825 = vmatpush1.msk.msra.mxu1 %vm454_vm3, %v441_v60 }
 0x115   : > { %826 = vmatmul.mubr.msk.f32.vlgmr.msra.gmra.mrb[4].mxu1 %vm450_vm4, %v443_v58 }
 0x1e6   : > { %v533_v0 = vpop.f32.mrb[4].mxu0 }
 0x1e7   : > { %v534_v2 = vadd.f32 %v533_v0, %v448_v63  ;;  %v535_v3 = vpop.f32.mrb[5].mxu0 }
 0x1e8   : > { %v536_v5 = vadd.f32 %v535_v3, %v448_v63  ;;  %v604_v8 = vpop.f32.mrb[4].mxu1 }
 0x1e9   : > { %v1101_v6 = vadd.f32 %v609_v62, %v534_v2  ;;  %v605_v10 = vadd.f32 %v604_v8, %v448_v63  ;;  %v606_v11 = vpop.f32.mrb[5].mxu1 }
 0x1ea   : > { %v1103_v7 = vadd.f32 %v613_v1, %v536_v5  ;;  %v607_v14 = vadd.f32 %v606_v11, %v448_v63 }
 0x1eb   : > { %v621_v12 = vsel %vm454_vm3, %v1101_v6, 0.0  ;;  %v633_v13 = vmul.f32 %v1101_v6, %v1101_v6  ;;  %v1113_v17 = vadd.f32 %v610_v4, %v605_v10 }
 0x1ec   : > { %v622_v15 = vsel %vm454_vm3, %v1103_v7, 0.0  ;;  %v634_v16 = vmul.f32 %v1103_v7, %v1103_v7  ;;  %v1116_v20 = vadd.f32 %v614_v9, %v607_v14 }
 0x1ed   : > { %v623_v18 = vadd.f32 %v622_v15, %v621_v12  ;;  %v635_v19 = vsel %vm454_vm3, %v633_v13, 0.0  ;;  %v667_v23 = vsel %vm454_vm3, %v1113_v17, 0.0  ;;  %v679_v25 = vmul.f32 %v1113_v17, %v1113_v17 }
 0x1ee   : > { %v636_v21 = vsel %vm454_vm3, %v634_v16, 0.0  ;;  %v668_v24 = vsel %vm454_vm3, %v1116_v20, 0.0  ;;  %v680_v26 = vmul.f32 %v1116_v20, %v1116_v20 }
 0x1ef   : > { %624 = vadd.xlane.f32.xlu0 %v623_v18  ;;  %v637_v22 = vadd.f32 %v636_v21, %v635_v19  ;;  %v669_v27 = vadd.f32 %v668_v24, %v667_v23  ;;  %v681_v28 = vsel %vm454_vm3, %v679_v25, 0.0 }
 0x1f0   : > { %v682_v29 = vsel %vm454_vm3, %v680_v26, 0.0 }
 0x1f1   : > { %638 = vadd.xlane.f32.xlu1 %v637_v22  ;;  %v683_v30 = vadd.f32 %v682_v29, %v681_v28 }
 0x1f5   : > { %670 = vadd.xlane.f32.xlu1 %v669_v27 }
 0x1f9   : > { %684 = vadd.xlane.f32.xlu1 %v683_v30 }
 0x27c   : > { %v625_v31 = vpop.xlane.xlu0 %624 }
 0x27d   : > { %v626_v32 = vrot.slane %v625_v31, 4 }
 0x27e   : > { %v639_v33 = vpop.xlane.xlu1 %638 }
 0x27f   : > { %v627_v34 = vadd.f32 %v626_v32, %v625_v31  ;;  %v640_v35 = vrot.slane %v639_v33, 4 }
 0x281   : > { %v628_v36 = vrot.slane %v627_v34, 2  ;;  %v641_v37 = vadd.f32 %v640_v35, %v639_v33 }
 0x282   : > { %v671_v45 = vpop.xlane.xlu1 %670 }
 0x283   : > { %v642_v38 = vrot.slane %v641_v37, 2  ;;  %v629_v39 = vadd.f32 %v628_v36, %v627_v34  ;;  %v672_v47 = vrot.slane %v671_v45, 4 }
 0x285   : > { %v630_v40 = vrot.slane %v629_v39, 1  ;;  %v643_v41 = vadd.f32 %v642_v38, %v641_v37  ;;  %v673_v49 = vadd.f32 %v672_v47, %v671_v45 }
 0x286   : > { %v685_v46 = vpop.xlane.xlu1 %684 }
 0x287   : > { %v631_v42 = vadd.f32 %v630_v40, %v629_v39  ;;  %v644_v43 = vrot.slane %v643_v41, 1  ;;  %v686_v48 = vrot.slane %v685_v46, 4  ;;  %v674_v51 = vrot.slane %v673_v49, 2 }
 0x289   : > { %835 = vpush %v631_v42  ;;  %v645_v44 = vadd.f32 %v644_v43, %v643_v41  ;;  %v687_v50 = vadd.f32 %v686_v48, %v685_v46  ;;  %v675_v54 = vadd.f32 %v674_v51, %v673_v49 }
 0x28b   : > { %837 = vpush %v645_v44  ;;  %v688_v52 = vrot.slane %v687_v50, 2  ;;  %v676_v56 = vrot.slane %v675_v54, 1 }
 0x28d   : > { %v689_v55 = vadd.f32 %v688_v52, %v687_v50  ;;  %v677_v59 = vadd.f32 %v676_v56, %v675_v54 }
 0x28f   : > { %v690_v57 = vrot.slane %v689_v55, 1 }
 0x291   : > { %v691_v60 = vadd.f32 %v690_v57, %v689_v55 }
 0x2ba   : > { %s836_s26 = spop %835 }
 0x2bb   : > { %s647_s30 = smul.f32 0.0009765625, %s836_s26 }
 0x2bc   : > { %s838_s6 = spop %837 }
 0x2bd   : > { %s649_s7 = smul.f32 %s647_s30, %s647_s30  ;;  %v652_v61 = vstv %s647_s30 }
 0x2be   : > { %s648_s8 = smul.f32 0.0009765625, %s838_s6  ;;  %v653_v62 = vsub.f32 %v1101_v6, %v652_v61  ;;  %v654_v63 = vsub.f32 %v1103_v7, %v652_v61  ;;  %s232_s6 = scalar_lea.vmem [#allocation2], %s803_s14 }
 0x2c0   : > { %s650_s9 = ssub.f32 %s648_s8, %s649_s7 }
 0x2c2   : > { %s651_s11 = smax.f32 %s996_s10, %s650_s9 }
 0x2c3   : > { %s655_s12 = sadd.f32 1e-05, %s651_s11  ;;  %s833_s11 = sshll.u32 %s1049_s22, 8 }
 0x2c4   : > { %s997_s22 = smov [#allocation2]  }
 0x2c5   : > { %v656_v53 = vstv %s655_s12  ;;  %s728_s12 = sshll.u32 %s232_s6, 4  ;;  %s1144_s12 = int_to_ptr.vmem [resolvable:$true] %s728_s12 }
 0x2c6   : > { %925 = vrsqrt.f32 %v656_v53 }
 0x2d0   : > { %v926_v58 = vpop.eup %925 }
 0x2d1   : > { %839 = vpush %v926_v58 }
 0x2d2   : > { %841 = vpush %v677_v59 }
 0x2d3   : > { %843 = vpush %v691_v60 }
 0x302   : > { %s840_s15 = spop %839 }
 0x303   : > { %v659_v0 = vstv %s840_s15  ;;  %s842_s16 = spop %841  ;;  %s1142_s15 = scalar_lea.hbm %s1191_s5, %s833_s11 }
 0x304   : > { %v660_v1 = vmul.f32 %v659_v0, %v653_v62  ;;  %v661_v2 = vmul.f32 %v659_v0, %v654_v63  ;;  %s693_s17 = smul.f32 0.0009765625, %s842_s16  ;;  %s844_s23 = spop %843 }
 0x305   : > { %s694_s25 = smul.f32 0.0009765625, %s844_s23  ;;  %s714_s16 = scalar_lea.sflag [#allocation3], %s230_s13 }
 0x306   : > { %v664_v3 = vcombine.low %v660_v1, %v661_v2  ;;  %s695_s26 = smul.f32 %s693_s17, %s693_s17  ;;  %v698_v6 = vstv %s693_s17  ;;  %s929_s17 = scalar_lea.vmem %s1144_s12, 256 }
 0x307   : > { %v699_v7 = vsub.f32 %v1113_v17, %v698_v6  ;;  %v700_v8 = vsub.f32 %v1116_v20, %v698_v6  ;;  %p930_p11 = scmp.ne.s32.totalorder %s1144_s12, %s929_s17  ;;  %s933_s23 = sshll.u32 %s997_s22, 4  ;;  %s934_s23 = int_to_ptr.vmem [resolvable:$false] %s933_s23 }
 0x308   : > { %666 = vst [vmem:[%s232_s6] sm:$0xff] %v664_v3  ;;  %s696_s30 = ssub.f32 %s694_s25, %s695_s26  ;;  %s935_s25 = scalar_lea.vmem %s934_s23, 512 }
 0x309   : > { %p931_p12 = pnand %p930_p11, %p1066_p5  ;;  %p936_p0 = scmp.lt.s32.totalorder %s1144_s12, %s934_s23 }
 0x30a   : > { %s697_s7 = smax.f32 %s996_s10, %s696_s30  ;;  %p937_p1 = scmp.lt.s32.totalorder %s935_s25, %s929_s17 }
 0x30b   : > { %s701_s8 = sadd.f32 1e-05, %s697_s7  ;;  %p932_p13 = pneg %p931_p12 }
 0x30c   : > { %p938_p2 = por %p937_p1, %p936_p0 }
 0x30d   : > { %v702_v4 = vstv %s701_s8 }
 0x30e   : > { %927 = vrsqrt.f32 %v702_v4  ;;  %p939_p3 = pnand %p938_p2, %p932_p13 }
 0x318   : > { %v928_v5 = vpop.eup %927 }
 0x319   : > { %845 = vpush %v928_v5 }
 0x34a   : > { %s846_s9 = spop %845 }
 0x34b   : > { %v705_v9 = vstv %s846_s9 }
 0x34c   : > { %v706_v10 = vmul.f32 %v705_v9, %v699_v7  ;;  %v707_v11 = vmul.f32 %v705_v9, %v700_v8 }
 0x34e   : > { %v710_v12 = vcombine.low %v706_v10, %v707_v11 }
 0x350   : > { %712 = vst [vmem:[%s232_s6 + $0x8] sm:$0xff] %v710_v12 }
 0x351   : > { %942 = shalt.err (!%p939_p3)
}
 0x352   : > { %s943_s13 = scalar_lea.hbm %s1142_s15, 256  ;;  %s947_s30 = scalar_lea.hbm %s1191_s5, 512 }
 0x353   : > { %p944_p4 = scmp.ne.s32.totalorder %s1142_s15, %s943_s13  ;;  %p948_p9 = scmp.lt.u32.totalorder %s1142_s15, %s1191_s5 }
 0x354   : > { %p949_p10 = scmp.lt.u32.totalorder %s947_s30, %s943_s13  ;;  %p951_p12 = scmp.lt.u32.totalorder %s943_s13, %s1142_s15 }
 0x355   : > { %p945_p7 = pnand %p944_p4, %p1066_p5 }
 0x356   : > { %p950_p11 = por %p949_p10, %p948_p9 }
 0x357   : > { %p946_p8 = pneg %p945_p7 }
 0x358   : > { %p952_p13 = por %p951_p12, %p950_p11 }
 0x35a   : > { %p953_p0 = pnand %p952_p13, %p946_p8 }
 0x35c   : > { %956 = shalt.err (!%p953_p0)
}
 0x35d   : > { %847 = dma.vmem_to_hbm [thread:$0]  (%p1066_p5), %s1144_s12, 256, %s1142_s15, %s714_s16  }
 0x35e PF: > { %p853_p1 = scmp.ge.s32.totalorder %s991_s21, 2  ;;  %s740_s9 = sand.u32 1, %s979_s18  }
 0x35f   : > { %s741_s11 = scalar_lea.sflag [#allocation3], %s740_s9 }
 0x360   : > { %p850_p2 = pnand %p853_p1, %p1070_p6 }
 0x362   : > { %974 = dma.done.wait (!%p850_p2), %s741_s11, 256  }
 0x363   : > { %976 = vsyncadd (!%p850_p2), %s741_s11, 4294967040  ;;  %p15_p3 = scmp.ge.s32.totalorder %s1053_s24, 4   ;;  %s1194_s18 = smov %s983_s19 }
 0x364   : > { %s1195_s19 = smov %s987_s20  ;;  %s1196_s20 = smov %s1064_s27 }
 0x365   : > { %s1197_s21 = smov %s1053_s24  ;;  %17 = sbr.rel (!%p15_p3) target bundleno = 3 (0x3), region = 78 }
 0x36c   :  { %746 = vsyncpa [#allocation3], 1 }
 0x36d   :  { %748 = vsyncpa [#allocation3 + $0x1], 1 }

</bundles_post_ra>
